<compile_context>
chip_gen: v7x
topology: tpu7x:2x2x1
jax: 0.10.0
libtpu: 0.0.40
codegen_flags: <defaults>
</compile_context>

<pallas_src>
import functools

import jax
import jax.numpy as jnp
from jax.experimental import pallas as pl
from jax.experimental.pallas import tpu as pltpu

LEAKY_SLOPE = 0.2
BN_EPS = 1e-5
SOFTPLUS_THRESHOLD = 20.0
NEG_BIG = -1e30


def _round_up(x, m):
    return (x + m - 1) // m * m


def _pick_tile(dim, max_tile):
    """Largest 128-multiple <= max_tile dividing dim, else the full dim."""
    if dim <= max_tile:
        return dim
    if dim % 128 == 0:
        t = (max_tile // 128) * 128
        while t >= 128:
            if dim % t == 0:
                return t
            t -= 128
    return dim


def _pick_out_tile(n128, max_tile):
    """Balance padded-weight bytes vs per-grid-step overhead (~1 512-lane DMA)."""
    best_t, best_cost = None, None
    t = 128
    while t <= min(max_tile, n128):
        npad = _round_up(n128, t)
        cost = npad + (npad // t) * 512
        if best_cost is None or cost < best_cost or (cost == best_cost and t > best_t):
            best_t, best_cost = t, cost
        t += 128
    return best_t


# -------------------------------------------------------------------------
# Kernel 1: one backbone layer — Linear -> LeakyReLU(0.2) -> folded BN(eval).
# N-tiled ("parallel") x K-tiled ("arbitrary") weight streaming with an f32
# VMEM accumulator.  Activations are tiny ([Bp, N] bf16), weights dominate.
# -------------------------------------------------------------------------
def _dense_bn_kernel(x_ref, w_ref, b_ref, sc_ref, sh_ref, o_ref, acc_ref):
    k = pl.program_id(1)

    @pl.when(k == 0)
    def _():
        acc_ref[...] = jnp.zeros_like(acc_ref)

    acc_ref[...] += jnp.dot(x_ref[...], w_ref[...],
                            preferred_element_type=jnp.float32)

    @pl.when(k == pl.num_programs(1) - 1)
    def _():
        y = acc_ref[...] + b_ref[...]
        y = jnp.where(y >= 0.0, y, LEAKY_SLOPE * y)      # LeakyReLU(0.2)
        y = y * sc_ref[...] + sh_ref[...]                # BatchNorm1d (eval, folded)
        o_ref[...] = y.astype(o_ref.dtype)
    # TODO(synk): nn.Dropout is identity in eval mode; training-mode dropout
    # and batch-statistic BatchNorm are intentionally not reproduced here.


def dense_bn_layer(x_bf16, layer):
    Bp, K = x_bf16.shape
    N = layer["w"].shape[1]
    tn, tk = layer["tn"], layer["tk"]
    return pl.pallas_call(
        _dense_bn_kernel,
        out_shape=jax.ShapeDtypeStruct((Bp, N), jnp.bfloat16),
        grid=(N // tn, K // tk),
        in_specs=[
            pl.BlockSpec((Bp, tk), lambda j, k: (0, k)),
            pl.BlockSpec((tk, tn), lambda j, k: (k, j)),
            pl.BlockSpec((1, tn), lambda j, k: (0, j)),
            pl.BlockSpec((1, tn), lambda j, k: (0, j)),
            pl.BlockSpec((1, tn), lambda j, k: (0, j)),
        ],
        out_specs=pl.BlockSpec((Bp, tn), lambda j, k: (0, j)),
        scratch_shapes=[pltpu.VMEM((Bp, tn), jnp.float32)],
        compiler_params=pltpu.CompilerParams(
            dimension_semantics=("parallel", "arbitrary")),
    )(x_bf16, layer["w"], layer["b"], layer["scale"], layer["shift"])


# -------------------------------------------------------------------------
# Kernel 2: MultiheadAttention, single query token per sample, static K/V.
#   * Q projection  : ONE [Bp,E]@[E,E] matmul (scale pre-folded), at chunk 0.
#   * score / PV    : per-head [Bp,hd]@[hd,tg] / [Bp,tg]@[tg,hd] only, with a
#                     gene-chunked online-softmax accumulator.
#   * out projection: ONE [Bp,E]@[E,E] matmul at the last gene chunk.
# K is head-major pre-transposed [nh, hd, Gp]; V is [nh, Gp, hd].
# -------------------------------------------------------------------------
def _mha_kernel(feat_ref, wq_ref, bq_ref, k_ref, v_ref, mask_ref, wo_ref,
                bo_ref, o_ref, q_sc, m_sc, l_sc, acc_sc, *, num_heads):
    g = pl.program_id(0)
    E = q_sc.shape[1]
    hd = E // num_heads

    @pl.when(g == 0)
    def _():
        q_sc[...] = (jnp.dot(feat_ref[...], wq_ref[...],
                             preferred_element_type=jnp.float32) + bq_ref[...])
        m_sc[...] = jnp.full(m_sc.shape, NEG_BIG, jnp.float32)
        l_sc[...] = jnp.zeros(l_sc.shape, jnp.float32)
        acc_sc[...] = jnp.zeros(acc_sc.shape, jnp.float32)

    mask = mask_ref[...]                                       # [1, tg]
    for h in range(num_heads):                                 # static unroll
        q_h = q_sc[:, h * hd:(h + 1) * hd].astype(jnp.bfloat16)
        s = jnp.dot(q_h, k_ref[h],
                    preferred_element_type=jnp.float32) + mask  # [Bp, tg]
        m_prev = m_sc[h]
        m_new = jnp.maximum(m_prev, jnp.max(s, axis=-1, keepdims=True))
        alpha = jnp.exp(m_prev - m_new)
        p = jnp.exp(s - m_new)
        l_sc[h] = alpha * l_sc[h] + jnp.sum(p, axis=-1, keepdims=True)
        ctx = jnp.dot(p.astype(jnp.bfloat16), v_ref[h],
                      preferred_element_type=jnp.float32)       # [Bp, hd]
        acc_sc[h] = alpha * acc_sc[h] + ctx
        m_sc[h] = m_new

    @pl.when(g == pl.num_programs(0) - 1)
    def _():
        parts = []
        for h in range(num_heads):
            inv_l = pl.reciprocal(l_sc[h], approx=True)         # EUP slot
            parts.append((acc_sc[h] * inv_l).astype(jnp.bfloat16))
        ctx_all = jnp.concatenate(parts, axis=-1)               # [Bp, E]
        out = jnp.dot(ctx_all, wo_ref[...],
                      preferred_element_type=jnp.float32) + bo_ref[...]
        o_ref[...] = out.astype(o_ref.dtype)
    # TODO(synk): on v7x a per-head "parallel" grid axis (ctx written as
    # [nh,Bp,hd], out-proj folded into the output kernel) would use both TCs.


def multihead_attention(feat_bf16, attn):
    Bp, E = feat_bf16.shape
    nh = attn["num_heads"]
    hd = E // nh
    tg = attn["gene_tile"]
    Gp = attn["k"].shape[2]
    kern = functools.partial(_mha_kernel, num_heads=nh)
    return pl.pallas_call(
        kern,
        out_shape=jax.ShapeDtypeStruct((Bp, E), jnp.bfloat16),
        grid=(Gp // tg,),
        in_specs=[
            pl.BlockSpec((Bp, E), lambda g: (0, 0)),       # feat
            pl.BlockSpec((E, E), lambda g: (0, 0)),        # wq (scale folded)
            pl.BlockSpec((1, E), lambda g: (0, 0)),        # bq (scale folded)
            pl.BlockSpec((nh, hd, tg), lambda g: (0, 0, g)),  # K chunk
            pl.BlockSpec((nh, tg, hd), lambda g: (0, g, 0)),  # V chunk
            pl.BlockSpec((1, tg), lambda g: (0, g)),       # pad mask
            pl.BlockSpec((E, E), lambda g: (0, 0)),        # wo
            pl.BlockSpec((1, E), lambda g: (0, 0)),        # bo
        ],
        out_specs=pl.BlockSpec((Bp, E), lambda g: (0, 0)),
        scratch_shapes=[
            pltpu.VMEM((Bp, E), jnp.float32),              # q
            pltpu.VMEM((nh, Bp, 1), jnp.float32),          # running max
            pltpu.VMEM((nh, Bp, 1), jnp.float32),          # running sum
            pltpu.VMEM((nh, Bp, hd), jnp.float32),         # running ctx
        ],
        compiler_params=pltpu.CompilerParams(
            dimension_semantics=("arbitrary",)),
    )(feat_bf16, attn["wq"], attn["bq"], attn["k"], attn["v"], attn["mask"],
      attn["wo"], attn["bo"])


# -------------------------------------------------------------------------
# Kernel 3: output Linear (hidden[-1] -> omics_dim) + Softplus.
# Streams the (padded) bf16 weight in wide lane-dense tiles; parallel grid.
# -------------------------------------------------------------------------
def _output_kernel(f_ref, w_ref, b_ref, o_ref):
    y = jnp.dot(f_ref[...], w_ref[...],
                preferred_element_type=jnp.float32) + b_ref[...]
    # torch.nn.Softplus(beta=1, threshold=20)
    o_ref[...] = jnp.where(y > SOFTPLUS_THRESHOLD, y,
                           jnp.log1p(jnp.exp(jnp.minimum(y, SOFTPLUS_THRESHOLD))))


def output_layer(feat_bf16, w_pad_bf16, b_pad, *, tile_n):
    Bp, E = feat_bf16.shape
    Np = w_pad_bf16.shape[1]
    return pl.pallas_call(
        _output_kernel,
        out_shape=jax.ShapeDtypeStruct((Bp, Np), jnp.float32),
        grid=(Np // tile_n,),
        in_specs=[
            pl.BlockSpec((Bp, E), lambda j: (0, 0)),
            pl.BlockSpec((E, tile_n), lambda j: (0, j)),
            pl.BlockSpec((1, tile_n), lambda j: (0, j)),
        ],
        out_specs=pl.BlockSpec((Bp, tile_n), lambda j: (0, j)),
        compiler_params=pltpu.CompilerParams(
            dimension_semantics=("parallel",)),
    )(feat_bf16, w_pad_bf16, b_pad)


# -------------------------------------------------------------------------
# One-time inference preparation: fold BN, cast weights to bf16, precompute
# static K/V (head-major, K pre-transposed), fold the softmax scale into
# Wq/bq, pick tiles, pad gene / omics axes.
# -------------------------------------------------------------------------
def prepare_inference_params(params, *, out_tile_n=2048, gene_tile=1024,
                             max_tile_n=512, max_tile_k=2048):
    prep = {"backbone": []}
    for layer in params["backbone"]:
        scale = layer["gamma"] * jax.lax.rsqrt(layer["running_var"] + BN_EPS)
        shift = layer["beta"] - layer["running_mean"] * scale
        K, N = layer["w_t"].shape
        prep["backbone"].append({
            "w": layer["w_t"].astype(jnp.bfloat16),
            "b": layer["b"].reshape(1, -1).astype(jnp.float32),
            "scale": scale.reshape(1, -1).astype(jnp.float32),
            "shift": shift.reshape(1, -1).astype(jnp.float32),
            "tk": _pick_tile(K, max_tile_k),
            "tn": _pick_tile(N, max_tile_n),
        })
    # TODO(synk): optional int8 (v5e/v6e) / fp8 (v7x) weight quantization of
    # the streamed backbone/output weights would ~halve HBM traffic.

    att = params["attn"]
    E = att["wq_t"].shape[0]
    nh = att["num_heads"]
    hd = E // nh
    sm_scale = 1.0 / (float(hd) ** 0.5)
    ge = params["gene_embeddings"]
    G = ge.shape[0]

    # Static K/V projections (gene_embeddings and Wk/Wv are fixed per model);
    # K is stored pre-transposed [nh, hd, G] so the in-kernel score matmul is
    # a plain [Bp,hd]@[hd,tg] with no XLU transpose.
    k = ge @ att["wk_t"] + att["bk"]
    v = ge @ att["wv_t"] + att["bv"]
    g128 = _round_up(G, 128)
    tg = min(gene_tile, g128)
    Gp = _round_up(g128, tg)
    k_hm = k.reshape(G, nh, hd).transpose(1, 2, 0)            # [nh, hd, G]
    v_hm = v.reshape(G, nh, hd).transpose(1, 0, 2)            # [nh, G, hd]
    k_hm = jnp.zeros((nh, hd, Gp), jnp.float32).at[:, :, :G].set(k_hm)
    v_hm = jnp.zeros((nh, Gp, hd), jnp.float32).at[:, :G, :].set(v_hm)
    mask = jnp.zeros((1, Gp), jnp.float32).at[:, G:].set(NEG_BIG)

    prep["attn"] = {
        "wq": (att["wq_t"] * sm_scale).astype(jnp.bfloat16),  # scale folded
        "bq": (att["bq"] * sm_scale).reshape(1, E).astype(jnp.float32),
        "k": k_hm.astype(jnp.bfloat16),
        "v": v_hm.astype(jnp.bfloat16),
        "mask": mask,
        "wo": att["wo_t"].astype(jnp.bfloat16),
        "bo": att["bo"].reshape(1, E).astype(jnp.float32),
        "num_heads": nh,
        "gene_tile": tg,
    }

    w_out = params["out"]["w_t"]
    b_out = params["out"]["b"]
    N = w_out.shape[1]
    n128 = _round_up(N, 128)
    tile = _pick_out_tile(n128, out_tile_n)                   # lane-dense tile
    Np = _round_up(n128, tile)
    w_pad = jnp.zeros((E, Np), jnp.float32).at[:, :N].set(w_out).astype(jnp.bfloat16)
    b_pad = jnp.zeros((1, Np), jnp.float32).at[0, :N].set(b_out)
    prep["out"] = {"w": w_pad, "b": b_pad, "tile_n": tile, "omics_dim": N}
    return prep


# -------------------------------------------------------------------------
# Full forward pass
# -------------------------------------------------------------------------
def omics_decoder_forward(latent, prep):
    B = latent.shape[0]
    x = latent.reshape(B, -1).astype(jnp.float32)             # nn.Flatten()
    Bp = _round_up(max(B, 16), 16)                            # bf16 packs (16,128)
    if Bp != B:
        x = jnp.pad(x, ((0, Bp - B), (0, 0)))
    x = x.astype(jnp.bfloat16)
    for layer in prep["backbone"]:
        x = dense_bn_layer(x, layer)
    feat = multihead_attention(x, prep["attn"])
    out = output_layer(feat, prep["out"]["w"], prep["out"]["b"],
                       tile_n=prep["out"]["tile_n"])
    return out[:B, :prep["out"]["omics_dim"]]


# -------------------------------------------------------------------------
# Pure-JAX reference mirroring the same bf16 cast points (correctness check)
# -------------------------------------------------------------------------
def reference_forward(latent, params):
    bf = lambda a: a.astype(jnp.bfloat16)
    B = latent.shape[0]
    x = latent.reshape(B, -1).astype(jnp.float32)
    xb = bf(x)
    for layer in params["backbone"]:
        y = jnp.dot(xb, bf(layer["w_t"]),
                    preferred_element_type=jnp.float32) + layer["b"]
        y = jnp.where(y >= 0, y, LEAKY_SLOPE * y)
        scale = layer["gamma"] * jax.lax.rsqrt(layer["running_var"] + BN_EPS)
        shift = layer["beta"] - layer["running_mean"] * scale
        xb = bf(y * scale + shift)
    att = params["attn"]
    ge = params["gene_embeddings"]
    nh = att["num_heads"]
    E = att["wq_t"].shape[0]
    hd = E // nh
    sm_scale = 1.0 / (float(hd) ** 0.5)
    kb = bf(ge @ att["wk_t"] + att["bk"])
    vb = bf(ge @ att["wv_t"] + att["bv"])
    q = (jnp.dot(xb, bf(att["wq_t"] * sm_scale),
                 preferred_element_type=jnp.float32) + att["bq"] * sm_scale)
    ctx_parts = []
    for h in range(nh):
        sl = slice(h * hd, (h + 1) * hd)
        s = jnp.dot(bf(q[:, sl]), kb[:, sl].T,
                    preferred_element_type=jnp.float32)
        s = s - jnp.max(s, axis=-1, keepdims=True)
        p = jnp.exp(s)
        p = p / jnp.sum(p, axis=-1, keepdims=True)
        ctx_parts.append(bf(jnp.dot(bf(p), vb[:, sl],
                                    preferred_element_type=jnp.float32)))
    ctx = jnp.concatenate(ctx_parts, axis=-1)
    featb = bf(jnp.dot(ctx, bf(att["wo_t"]),
                       preferred_element_type=jnp.float32) + att["bo"])
    y = jnp.dot(featb, bf(params["out"]["w_t"]),
                preferred_element_type=jnp.float32) + params["out"]["b"]
    return jnp.where(y > SOFTPLUS_THRESHOLD, y,
                     jnp.log1p(jnp.exp(jnp.minimum(y, SOFTPLUS_THRESHOLD))))


# -------------------------------------------------------------------------
# Deterministic parameter construction (synthetic, no checkpoint loading)
# -------------------------------------------------------------------------
def make_params(key, latent_dim, hidden_dims, omics_dim, gene_count, num_heads):
    def dense(k, fan_in, fan_out):
        kw, kb = jax.random.split(k)
        s = 1.0 / jnp.sqrt(fan_in)
        w_t = jax.random.uniform(kw, (fan_in, fan_out), jnp.float32, -s, s)
        b = jax.random.uniform(kb, (fan_out,), jnp.float32, -s, s)
        return w_t, b

    keys = jax.random.split(key, 16)
    params = {"backbone": []}
    in_dim = latent_dim
    for i, hd in enumerate(hidden_dims):
        kw, kbn = jax.random.split(keys[i])
        w_t, b = dense(kw, in_dim, hd)
        k1, k2, k3, k4 = jax.random.split(kbn, 4)
        params["backbone"].append({
            "w_t": w_t, "b": b,
            "gamma": 1.0 + 0.1 * jax.random.normal(k1, (hd,), jnp.float32),
            "beta": 0.1 * jax.random.normal(k2, (hd,), jnp.float32),
            "running_mean": 0.1 * jax.random.normal(k3, (hd,), jnp.float32),
            "running_var": 1.0 + 0.1 * jax.random.uniform(k4, (hd,), jnp.float32),
        })
        in_dim = hd

    E = hidden_dims[-1]
    wq_t, bq = dense(keys[8], E, E)
    wk_t, bk = dense(keys[9], E, E)
    wv_t, bv = dense(keys[10], E, E)
    wo_t, bo = dense(keys[11], E, E)
    params["attn"] = {"wq_t": wq_t, "wk_t": wk_t, "wv_t": wv_t, "wo_t": wo_t,
                      "bq": bq, "bk": bk, "bv": bv, "bo": bo,
                      "num_heads": num_heads}
    params["gene_embeddings"] = 0.2 * jax.random.normal(
        keys[12], (gene_count, E), jnp.float32)
    w_out_t, b_out = dense(keys[13], E, omics_dim)
    params["out"] = {"w_t": w_out_t, "b": b_out}
    return params


if __name__ == "__main__":
    # Small shapes consistent with the module:
    # latent [B, C, H, W] -> latent_dim = C*H*W
    B, C, H, W = 2, 4, 8, 8
    latent_dim = C * H * W                 # 256
    hidden_dims = [256, 128, 128]          # scaled-down [2048, 1024, 512]
    omics_dim = 256                        # scaled-down 10000 (padding handles odd dims)
    gene_count = 64
    num_heads = 8

    key = jax.random.PRNGKey(0)
    k_lat, k_par = jax.random.split(key)
    latent = jax.random.normal(k_lat, (B, C, H, W), jnp.float32)
    params = make_params(k_par, latent_dim, hidden_dims, omics_dim,
                         gene_count, num_heads)
    prep = prepare_inference_params(params)

    out = jax.block_until_ready(omics_decoder_forward(latent, prep))
    ref = jax.block_until_ready(reference_forward(latent, params))

    assert out.shape == (B, omics_dim), out.shape
    max_err = float(jnp.max(jnp.abs(out - ref)))
    assert jnp.allclose(out, ref, rtol=1e-2, atol=1e-2), max_err

    print("KERNEL_OK")
</pallas_src>

<mosaic_0001>
module attributes {stable_mosaic.version = 11 : i64} {
  func.func @_dense_bn_kernel(%arg0: i32, %arg1: i32, %arg2: memref<16x256xbf16, #tpu.memory_space<vmem>>, %arg3: memref<256x256xbf16, #tpu.memory_space<vmem>>, %arg4: memref<1x256xf32, #tpu.memory_space<vmem>>, %arg5: memref<1x256xf32, #tpu.memory_space<vmem>>, %arg6: memref<1x256xf32, #tpu.memory_space<vmem>>, %arg7: memref<16x256xbf16, #tpu.memory_space<vmem>>, %arg8: memref<16x256xf32, #tpu.memory_space<vmem>>) attributes {dimension_semantics = [#tpu.dimension_semantics<parallel>, #tpu.dimension_semantics<arbitrary>], iteration_bounds = array<i64: 1, 1>, scalar_prefetch = 0 : i64, scratch_operands = 1 : i64, tpu.core_type = #tpu.core_type<tc>, window_params = [{transform_indices = @transform_0, window_bounds = array<i64: 16, 256>}, {transform_indices = @transform_1, window_bounds = array<i64: 256, 256>}, {transform_indices = @transform_2, window_bounds = array<i64: 1, 256>}, {transform_indices = @transform_3, window_bounds = array<i64: 1, 256>}, {transform_indices = @transform_4, window_bounds = array<i64: 1, 256>}, {transform_indices = @transform_5, window_bounds = array<i64: 16, 256>}]} {
    %c0_i32 = arith.constant 0 : i32
    %0 = arith.cmpi eq, %arg1, %c0_i32 : i32
    %1 = arith.extui %0 : i1 to i32
    %c0_i32_0 = arith.constant 0 : i32
    %2 = arith.cmpi ne, %1, %c0_i32_0 : i32
    scf.if %2 {
      %cst_10 = arith.constant 0.000000e+00 : f32
      %12 = vector.broadcast %cst_10 : f32 to vector<16x256xf32>
      %c0_11 = arith.constant 0 : index
      %c0_12 = arith.constant 0 : index
      %13 = vector.load %arg8[%c0_11, %c0_12] : memref<16x256xf32, #tpu.memory_space<vmem>>, vector<16x256xf32>
      tpu.vector_store %arg8[%c0_11, %c0_12], %12 {strides = array<i32>} : memref<16x256xf32, #tpu.memory_space<vmem>>, vector<16x256xf32>,
    } else {
    }
    %c0 = arith.constant 0 : index
    %c0_1 = arith.constant 0 : index
    %3 = vector.load %arg8[%c0, %c0_1] : memref<16x256xf32, #tpu.memory_space<vmem>>, vector<16x256xf32>
    %c0_2 = arith.constant 0 : index
    %c0_3 = arith.constant 0 : index
    %4 = vector.load %arg2[%c0_2, %c0_3] : memref<16x256xbf16, #tpu.memory_space<vmem>>, vector<16x256xbf16>
    %c0_4 = arith.constant 0 : index
    %c0_5 = arith.constant 0 : index
    %5 = vector.load %arg3[%c0_4, %c0_5] : memref<256x256xbf16, #tpu.memory_space<vmem>>, vector<256x256xbf16>
    %cst = arith.constant dense<0.000000e+00> : vector<16x256xf32>
    %6 = tpu.matmul %4, %5, %cst {dimension_numbers = #tpu.dot_dimension_numbers<[1], [0], [0], [1], [0, 0, 1, 1], [], []>} : vector<16x256xbf16>, vector<256x256xbf16>, vector<16x256xf32> -> vector<16x256xf32>
    %7 = arith.addf %3, %6 : vector<16x256xf32>
    %c0_6 = arith.constant 0 : index
    %c0_7 = arith.constant 0 : index
    %8 = vector.load %arg8[%c0_6, %c0_7] : memref<16x256xf32, #tpu.memory_space<vmem>>, vector<16x256xf32>
    tpu.vector_store %arg8[%c0_6, %c0_7], %7 {strides = array<i32>} : memref<16x256xf32, #tpu.memory_space<vmem>>, vector<16x256xf32>,
    %c0_i32_8 = arith.constant 0 : i32
    %9 = arith.cmpi eq, %arg1, %c0_i32_8 : i32
    %10 = arith.extui %9 : i1 to i32
    %c0_i32_9 = arith.constant 0 : i32
    %11 = arith.cmpi ne, %10, %c0_i32_9 : i32
    scf.if %11 {
      %c0_10 = arith.constant 0 : index
      %c0_11 = arith.constant 0 : index
      %12 = vector.load %arg8[%c0_10, %c0_11] : memref<16x256xf32, #tpu.memory_space<vmem>>, vector<16x256xf32>
      %c0_12 = arith.constant 0 : index
      %c0_13 = arith.constant 0 : index
      %13 = vector.load %arg4[%c0_12, %c0_13] : memref<1x256xf32, #tpu.memory_space<vmem>>, vector<1x256xf32>
      %14 = vector.broadcast %13 : vector<1x256xf32> to vector<16x256xf32>
      %15 = arith.addf %12, %14 : vector<16x256xf32>
      %cst_14 = arith.constant 0.000000e+00 : f32
      %16 = vector.broadcast %cst_14 : f32 to vector<16x256xf32>
      %17 = arith.cmpf oge, %15, %16 : vector<16x256xf32>
      %cst_15 = arith.constant 2.000000e-01 : f32
      %18 = vector.broadcast %cst_15 : f32 to vector<16x256xf32>
      %19 = arith.mulf %18, %15 : vector<16x256xf32>
      %20 = arith.select %17, %15, %19 : vector<16x256xi1>, vector<16x256xf32>
      %c0_16 = arith.constant 0 : index
      %c0_17 = arith.constant 0 : index
      %21 = vector.load %arg5[%c0_16, %c0_17] : memref<1x256xf32, #tpu.memory_space<vmem>>, vector<1x256xf32>
      %22 = vector.broadcast %21 : vector<1x256xf32> to vector<16x256xf32>
      %23 = arith.mulf %20, %22 : vector<16x256xf32>
      %c0_18 = arith.constant 0 : index
      %c0_19 = arith.constant 0 : index
      %24 = vector.load %arg6[%c0_18, %c0_19] : memref<1x256xf32, #tpu.memory_space<vmem>>, vector<1x256xf32>
      %25 = vector.broadcast %24 : vector<1x256xf32> to vector<16x256xf32>
      %26 = arith.addf %23, %25 : vector<16x256xf32>
      %27 = arith.truncf %26 : vector<16x256xf32> to vector<16x256xbf16>
      %c0_20 = arith.constant 0 : index
      %c0_21 = arith.constant 0 : index
      %28 = vector.load %arg7[%c0_20, %c0_21] : memref<16x256xbf16, #tpu.memory_space<vmem>>, vector<16x256xbf16>
      tpu.vector_store %arg7[%c0_20, %c0_21], %27 {strides = array<i32>} : memref<16x256xbf16, #tpu.memory_space<vmem>>, vector<16x256xbf16>,
    } else {
    }
    return
  }
  func.func @transform_0(%arg0: i32, %arg1: i32) -> (i32, i32) {
    %c0_i32 = arith.constant 0 : i32
    %c0_i32_0 = arith.constant 0 : i32
    return %c0_i32, %arg1 : i32, i32
  }
  func.func @transform_1(%arg0: i32, %arg1: i32) -> (i32, i32) {
    %c0_i32 = arith.constant 0 : i32
    return %arg1, %arg0 : i32, i32
  }
  func.func @transform_2(%arg0: i32, %arg1: i32) -> (i32, i32) {
    %c0_i32 = arith.constant 0 : i32
    %c0_i32_0 = arith.constant 0 : i32
    return %c0_i32, %arg0 : i32, i32
  }
  func.func @transform_3(%arg0: i32, %arg1: i32) -> (i32, i32) {
    %c0_i32 = arith.constant 0 : i32
    %c0_i32_0 = arith.constant 0 : i32
    return %c0_i32, %arg0 : i32, i32
  }
  func.func @transform_4(%arg0: i32, %arg1: i32) -> (i32, i32) {
    %c0_i32 = arith.constant 0 : i32
    %c0_i32_0 = arith.constant 0 : i32
    return %c0_i32, %arg0 : i32, i32
  }
  func.func @transform_5(%arg0: i32, %arg1: i32) -> (i32, i32) {
    %c0_i32 = arith.constant 0 : i32
    %c0_i32_0 = arith.constant 0 : i32
    return %c0_i32, %arg0 : i32, i32
  }
}

</mosaic_0001>

<bundles_post_ra>
// kernel: tpu_custom_call.1
= control target key start
LH: loop header
LB: loop body
LE: loop exit
PB: predicated region body
PF: predicated region fallthrough
CT: control target
= control target key end

     0   :  { %10 = vsyncpa [#allocation4], 0  ;;  %s670_s0 = inlined_call_operand.hbm [shape: bf16[16,256], index: 0, kind: input, shape index: {}]   ;;  %s671_s1 = inlined_call_operand.hbm [shape: bf16[256,256], index: 1, kind: input, shape index: {}]   ;;  %s672_s2 = inlined_call_operand.vmem [shape: f32[1,256], index: 2, kind: input, shape index: {}]   ;;  %s673_s3 = inlined_call_operand.vmem [shape: f32[1,256], index: 3, kind: input, shape index: {}]   ;;  %s674_s4 = inlined_call_operand.vmem [shape: f32[1,256], index: 4, kind: input, shape index: {}]   ;;  %s675_s5 = inlined_call_operand.hbm [shape: bf16[16,256], index: 5, kind: output, shape index: {}]  }
   0x1   :  { %11 = vsyncpa [#allocation7], 0 }
   0x2   :  { %12 = vsyncpa [#allocation5], 0  ;;  %s581_s18 = smov [#allocation3]   ;;  %s509_s22 = scalar_lea.hbm %s670_s0, 256 }
   0x3   :  { %s18_s19 = sshll.u32 %s581_s18, 4  ;;  %p510_p0 = scmp.ne.s32.totalorder %s670_s0, %s509_s22  ;;  %s19_s19 = int_to_ptr.vmem [resolvable:$true] %s18_s19 }
   0x4   :  { %p513_p1 = scmp.lt.u32.totalorder %s509_s22, %s670_s0 }
   0x6   :  { %p515_p2 = pnand %p513_p1, %p510_p0 }
   0x8   :  { %518 = shalt.err (!%p515_p2)
}
   0x9   :  { %s519_s27 = scalar_lea.vmem %s19_s19, 256  ;;  %p524_p4 = scmp.lt.s32.totalorder %s19_s19, %s19_s19 }
   0xa   :  { %p520_p3 = scmp.ne.s32.totalorder %s19_s19, %s519_s27  ;;  %p525_p5 = scmp.lt.s32.totalorder %s519_s27, %s519_s27 }
   0xc   :  { %p526_p6 = por %p525_p5, %p524_p4 }
   0xe   :  { %p527_p7 = pnand %p526_p6, %p520_p3 }
  0x10   :  { %530 = shalt.err (!%p527_p7)
}
  0x11   :  { %s582_s28 = smov 128   ;;  %s583_s29 = smov 8  }
  0x12   :  { %24 = dma.hbm_to_vmem [thread:$0]  %s670_s0, 256, %s19_s19, [#allocation4], %s582_s28, %s582_s28, %s583_s29  }
  0x13   :  { %s584_s7 = smov [#allocation6]   ;;  %s531_s11 = scalar_lea.hbm %s671_s1, 4096 }
  0x14   :  { %s30_s8 = sshll.u32 %s584_s7, 4  ;;  %p532_p8 = scmp.ne.s32.totalorder %s671_s1, %s531_s11  ;;  %s31_s8 = int_to_ptr.vmem [resolvable:$true] %s30_s8 }
  0x15   :  { %p535_p9 = scmp.lt.u32.totalorder %s531_s11, %s671_s1 }
  0x17   :  { %p537_p10 = pnand %p535_p9, %p532_p8 }
  0x19   :  { %540 = shalt.err (!%p537_p10)
}
  0x1a   :  { %s541_s16 = scalar_lea.vmem %s31_s8, 4096  ;;  %p546_p12 = scmp.lt.s32.totalorder %s31_s8, %s31_s8 }
  0x1b   :  { %p542_p11 = scmp.ne.s32.totalorder %s31_s8, %s541_s16  ;;  %p547_p13 = scmp.lt.s32.totalorder %s541_s16, %s541_s16 }
  0x1d   :  { %p548_p0 = por %p547_p13, %p546_p12 }
  0x1f   :  { %p549_p1 = pnand %p548_p0, %p542_p11 }
  0x21   :  { %552 = shalt.err (!%p549_p1)
}
  0x22   :  { %36 = dma.hbm_to_vmem [thread:$0]  %s671_s1, 4096, %s31_s8, [#allocation7], %s582_s28, %s582_s28, %s583_s29  }
  0x23   :  { %575 = dma.done.wait [#allocation4], 256  }
  0x24   :  { %576 = vsyncadd [#allocation4], 4294967040 }
  0x25   :  { %577 = dma.done.wait [#allocation7], 4096  }
  0x26   :  { %578 = vsyncadd [#allocation7], 4294963200  ;;  %v458_v0 = vld [vmem:[#allocation6 + $0x4] ss:$8 sps:$4 sm:$0xff]   ;;  %v460_v1 = vld [vmem:[#allocation6] ss:$8 sps:$4 sm:$0xff]   ;;  %v325_v34 = vlaneseq }
  0x27   :  { %265 = vmatprep.subr.bf16.mxu0 %v458_v0  ;;  %v461_v2 = vld [vmem:[#allocation6 + $0x14] ss:$8 sps:$4 sm:$0xff]   ;;  %v463_v3 = vld [vmem:[#allocation6 + $0x10] ss:$8 sps:$4 sm:$0xff]   ;;  %v464_v4 = vld [vmem:[#allocation6 + $0x24] ss:$8 sps:$4 sm:$0xff]  }
  0x28   :  { %266 = vmatpush1.bf16.msra.mxu0 %v460_v1  ;;  %v466_v5 = vld [vmem:[#allocation6 + $0x20] ss:$8 sps:$4 sm:$0xff]   ;;  %v467_v6 = vld [vmem:[#allocation6 + $0x34] ss:$8 sps:$4 sm:$0xff]   ;;  %v469_v7 = vld [vmem:[#allocation6 + $0x30] ss:$8 sps:$4 sm:$0xff]  }
  0x29   :  { %267 = vmatprep.subr.bf16.mxu0 %v461_v2  ;;  %v470_v8 = vld [vmem:[#allocation6 + $0x44] ss:$8 sps:$4 sm:$0xff]   ;;  %v472_v9 = vld [vmem:[#allocation6 + $0x40] ss:$8 sps:$4 sm:$0xff]   ;;  %v473_v10 = vld [vmem:[#allocation6 + $0x54] ss:$8 sps:$4 sm:$0xff]  }
  0x2a   :  { %v475_v11 = vld [vmem:[#allocation6 + $0x50] ss:$8 sps:$4 sm:$0xff]   ;;  %v476_v12 = vld [vmem:[#allocation6 + $0x64] ss:$8 sps:$4 sm:$0xff]   ;;  %v508_v13 = vld [vmem:[#allocation3 + $0x4] ss:$8 sps:$4 sm:$0xff]  }
  0x2b   :  { %v478_v14 = vld [vmem:[#allocation6 + $0x60] ss:$8 sps:$4 sm:$0xff]   ;;  %v479_v15 = vld [vmem:[#allocation6 + $0x74] ss:$8 sps:$4 sm:$0xff]   ;;  %297 = vmatprep.mubr.bf16.mxu0 %v508_v13  ;;  %v481_v16 = vld [vmem:[#allocation6 + $0x70] ss:$8 sps:$4 sm:$0xff]  }
  0x2c   :  { %268 = vmatpush1.bf16.msra.mxu0 %v463_v3  ;;  %v482_v17 = vld [vmem:[#allocation6 + $0x84] ss:$8 sps:$4 sm:$0xff]   ;;  %v484_v18 = vld [vmem:[#allocation6 + $0x80] ss:$8 sps:$4 sm:$0xff]   ;;  %v485_v19 = vld [vmem:[#allocation6 + $0x94] ss:$8 sps:$4 sm:$0xff]  }
  0x2d   :  { %269 = vmatprep.subr.bf16.mxu0 %v464_v4  ;;  %v487_v20 = vld [vmem:[#allocation6 + $0x90] ss:$8 sps:$4 sm:$0xff]   ;;  %v488_v21 = vld [vmem:[#allocation6 + $0xa4] ss:$8 sps:$4 sm:$0xff]   ;;  %v490_v22 = vld [vmem:[#allocation6 + $0xa0] ss:$8 sps:$4 sm:$0xff]  }
  0x2e   :  { %v491_v23 = vld [vmem:[#allocation6 + $0xb4] ss:$8 sps:$4 sm:$0xff]   ;;  %v493_v24 = vld [vmem:[#allocation6 + $0xb0] ss:$8 sps:$4 sm:$0xff]   ;;  %v494_v25 = vld [vmem:[#allocation6 + $0xc4] ss:$8 sps:$4 sm:$0xff]  }
  0x2f   :  { %v496_v26 = vld [vmem:[#allocation6 + $0xc0] ss:$8 sps:$4 sm:$0xff]   ;;  %v497_v27 = vld [vmem:[#allocation6 + $0xd4] ss:$8 sps:$4 sm:$0xff]   ;;  %v499_v28 = vld [vmem:[#allocation6 + $0xd0] ss:$8 sps:$4 sm:$0xff]  }
  0x30   :  { %270 = vmatpush1.bf16.msra.mxu0 %v466_v5  ;;  %v500_v29 = vld [vmem:[#allocation6 + $0xe4] ss:$8 sps:$4 sm:$0xff]   ;;  %v502_v30 = vld [vmem:[#allocation6 + $0xe0] ss:$8 sps:$4 sm:$0xff]   ;;  %v503_v31 = vld [vmem:[#allocation6 + $0xf4] ss:$8 sps:$4 sm:$0xff]  }
  0x31   :  { %271 = vmatprep.subr.bf16.mxu0 %v467_v6  ;;  %v505_v32 = vld [vmem:[#allocation6 + $0xf0] ss:$8 sps:$4 sm:$0xff]   ;;  %v326_v35 = vshrl.u32 %v325_v34, 7 }
  0x32   :  { %v506_v33 = vld [vmem:[#allocation3] ss:$8 sps:$4 sm:$0xff]  }
  0x33   :  { %v327_v36 = vsub.s32 0, %v326_v35  ;;  %v323_v37 = vld [vmem:[%s672_s2] sm:$0x3]  ;;  %v331_v38 = vsub.s32 1, %v326_v35  ;;  %s585_s2 = smov [#allocation8]  }
  0x34   :  { %272 = vmatpush1.bf16.msra.mxu0 %v469_v7  ;;  %v351_v41 = vld [vmem:[%s673_s3] sm:$0x3]  ;;  %s402_s3 = sshll.u32 %s585_s2, 4  ;;  %s403_s3 = int_to_ptr.vmem [resolvable:$true] %s402_s3 }
  0x35   :  { %273 = vmatprep.subr.bf16.mxu0 %v470_v8  ;;  %v328_v39 = vrot.slane %v323_v37, %v327_v36  ;;  %v332_v40 = vrot.slane %v323_v37, %v331_v38  ;;  %v367_v45 = vld [vmem:[%s674_s4] sm:$0x3]  ;;  %v356_v46 = vrot.slane %v351_v41, %v327_v36  ;;  %v360_v50 = vrot.slane %v351_v41, %v331_v38  ;;  %s553_s4 = scalar_lea.vmem %s403_s3, 256  ;;  %p558_p3 = scmp.lt.s32.totalorder %s403_s3, %s403_s3 }
  0x36   :  { %v372_v55 = vrot.slane %v367_v45, %v327_v36  ;;  %v376_v58 = vrot.slane %v367_v45, %v331_v38  ;;  %p554_p2 = scmp.ne.s32.totalorder %s403_s3, %s553_s4  ;;  %p559_p4 = scmp.lt.s32.totalorder %s553_s4, %s553_s4 }
  0x38   :  { %274 = vmatpush1.bf16.msra.mxu0 %v472_v9  ;;  %p560_p5 = por %p559_p4, %p558_p3 }
  0x39   :  { %275 = vmatprep.subr.bf16.mxu0 %v473_v10 }
  0x3a   :  { %p561_p6 = pnand %p560_p5, %p554_p2 }
  0x3c   :  { %276 = vmatpush1.bf16.msra.mxu0 %v475_v11 }
  0x3d   :  { %277 = vmatprep.subr.bf16.mxu0 %v476_v12 }
  0x40   :  { %278 = vmatpush1.bf16.msra.mxu0 %v478_v14 }
  0x41   :  { %279 = vmatprep.subr.bf16.mxu0 %v479_v15 }
  0x44   :  { %280 = vmatpush1.bf16.msra.mxu0 %v481_v16 }
  0x45   :  { %281 = vmatprep.subr.bf16.mxu0 %v482_v17 }
  0x48   :  { %282 = vmatpush1.bf16.msra.mxu0 %v484_v18 }
  0x49   :  { %283 = vmatprep.subr.bf16.mxu0 %v485_v19 }
  0x4c   :  { %284 = vmatpush1.bf16.msra.mxu0 %v487_v20 }
  0x4d   :  { %285 = vmatprep.subr.bf16.mxu0 %v488_v21 }
  0x50   :  { %286 = vmatpush1.bf16.msra.mxu0 %v490_v22 }
  0x51   :  { %287 = vmatprep.subr.bf16.mxu0 %v491_v23 }
  0x54   :  { %288 = vmatpush1.bf16.msra.mxu0 %v493_v24 }
  0x55   :  { %289 = vmatprep.subr.bf16.mxu0 %v494_v25 }
  0x58   :  { %290 = vmatpush1.bf16.msra.mxu0 %v496_v26 }
  0x59   :  { %291 = vmatprep.subr.bf16.mxu0 %v497_v27 }
  0x5c   :  { %292 = vmatpush1.bf16.msra.mxu0 %v499_v28 }
  0x5d   :  { %293 = vmatprep.subr.bf16.mxu0 %v500_v29 }
  0x60   :  { %294 = vmatpush1.bf16.msra.mxu0 %v502_v30 }
  0x61   :  { %295 = vmatprep.subr.bf16.mxu0 %v503_v31 }
  0x64   :  { %296 = vmatpush1.bf16.msra.mxu0 %v505_v32 }
  0x67   :  { %298 = vmatmul.mubr.bf16.vlgmr.msra.gmra.mrb[0].mxu0 %v506_v33 }
 0x13a   :  { %v299_v42 = vpop.f32.mrb[0].mxu0 }
 0x13b   :  { %v335_v43 = vadd.f32 %v328_v39, %v299_v42  ;;  %v301_v44 = vpop.f32.mrb[1].mxu0 }
 0x13c   :  { %v336_v47 = vadd.f32 %v332_v40, %v301_v44  ;;  %v303_v48 = vpop.f32.mrb[2].mxu0 }
 0x13d   :  { %vm339_vm0 = vcmp.ge.f32.partialorder %v335_v43, 0.0  ;;  %v343_v49 = vmul.f32 0.2, %v335_v43  ;;  %v337_v51 = vadd.f32 %v328_v39, %v303_v48  ;;  %v305_v52 = vpop.f32.mrb[3].mxu0 }
 0x13e   :  { %vm340_vm1 = vcmp.ge.f32.partialorder %v336_v47, 0.0  ;;  %v344_v53 = vmul.f32 0.2, %v336_v47  ;;  %v338_v54 = vadd.f32 %v332_v40, %v305_v52 }
 0x13f   :  { %v347_v56 = vsel %vm339_vm0, %v335_v43, %v343_v49  ;;  %vm341_vm2 = vcmp.ge.f32.partialorder %v337_v51, 0.0  ;;  %v345_v57 = vmul.f32 0.2, %v337_v51 }
 0x140   :  { %v363_v59 = vmul.f32 %v356_v46, %v347_v56  ;;  %v348_v60 = vsel %vm340_vm1, %v336_v47, %v344_v53  ;;  %vm342_vm3 = vcmp.ge.f32.partialorder %v338_v54, 0.0  ;;  %v346_v61 = vmul.f32 0.2, %v338_v54 }
 0x141   :  { %v364_v62 = vmul.f32 %v360_v50, %v348_v60  ;;  %v349_v63 = vsel %vm341_vm2, %v337_v51, %v345_v57 }
 0x142   :  { %v365_v0 = vmul.f32 %v356_v46, %v349_v63  ;;  %v350_v1 = vsel %vm342_vm3, %v338_v54, %v346_v61  ;;  %v379_v2 = vadd.f32 %v372_v55, %v363_v59 }
 0x143   :  { %v366_v3 = vmul.f32 %v360_v50, %v350_v1  ;;  %v380_v4 = vadd.f32 %v376_v58, %v364_v62 }
 0x144   :  { %v381_v5 = vadd.f32 %v372_v55, %v365_v0 }
 0x145   :  { %v382_v6 = vadd.f32 %v376_v58, %v366_v3  ;;  %v451_v7 = vpack.c.bf16 %v380_v4, %v379_v2 }
 0x147   :  { %v452_v8 = vpack.c.bf16 %v382_v6, %v381_v5  ;;  %395 = vst [vmem:[#allocation8] sm:$0xff] %v451_v7 }
 0x149   :  { %396 = vst [vmem:[#allocation8 + $0x8] sm:$0xff] %v452_v8 }
 0x14a   :  { %564 = shalt.err (!%p561_p6)
}
 0x14b   :  { %s565_s25 = scalar_lea.hbm %s675_s5, 256 }
 0x14c   :  { %p566_p7 = scmp.ne.s32.totalorder %s675_s5, %s565_s25  ;;  %p569_p8 = scmp.lt.u32.totalorder %s565_s25, %s675_s5 }
 0x14e   :  { %p571_p9 = pnand %p569_p8, %p566_p7 }
 0x150   :  { %574 = shalt.err (!%p571_p9)
}
 0x151   :  { %408 = dma.vmem_to_hbm [thread:$0]  %s403_s3, 256, %s675_s5, [#allocation5], %s582_s28, %s582_s28, %s583_s29  }
 0x152   :  { %579 = dma.done.wait [#allocation5], 256  }
 0x153   :  { %580 = vsyncadd [#allocation5], 4294967040 }
 0x154   :  { %412 = vsyncpa [#allocation4], 1 }
 0x155   :  { %413 = vsyncpa [#allocation7], 1 }
 0x156   :  { %414 = vsyncpa [#allocation5], 1 }

</bundles_post_ra>
